<compile_context>
chip_gen: v5e
topology: v5e:2x2
jax: 0.10.0
libtpu: 0.0.40
codegen_flags: <defaults>
</compile_context>

<pallas_src>
import functools
import math

import jax
import jax.numpy as jnp
from jax import lax
from jax.experimental import pallas as pl
from jax.experimental.pallas import tpu as pltpu

_LN_EPS = 1e-5  # PyTorch nn.LayerNorm default


# ----------------------------- kernels -------------------------------------


def _ln_plain_kernel(x_ref, g_ref, b_ref, o_ref, *, inv_c, eps):
    # x_ref: (tm, C) row tile; g_ref / b_ref: (1, C) broadcast parameters.
    x = x_ref[...].astype(jnp.float32)
    mean = jnp.sum(x, axis=-1, keepdims=True) * inv_c
    d = x - mean
    var = jnp.sum(d * d, axis=-1, keepdims=True) * inv_c   # two-pass: robust
    inv = lax.rsqrt(var + eps)                              # EUP slot
    y = d * inv * g_ref[...] + b_ref[...]
    o_ref[...] = y.astype(o_ref.dtype)


def _ln_packed_kernel(x_ref, s_ref, g_ref, b_ref, o_ref, *, inv_c, eps):
    # x_ref: (tm, g*C) -- each row holds g independent LayerNorm segments of
    # width C.  s_ref: (g*C, g*C) block-diagonal ones; x @ s gives every lane
    # its own segment's sum, so all loads/stores stay lane-dense even if C<128
    # and the reduction rides the otherwise-idle MXU.
    x = x_ref[...].astype(jnp.float32)
    seg = s_ref[...]
    mean = jnp.dot(x, seg, preferred_element_type=jnp.float32) * inv_c
    d = x - mean
    var = jnp.dot(d * d, seg, preferred_element_type=jnp.float32) * inv_c
    inv = lax.rsqrt(var + eps)                              # EUP slot
    y = d * inv * g_ref[...] + b_ref[...]
    o_ref[...] = y.astype(o_ref.dtype)


# ----------------------------- wrapper --------------------------------------


def _vmem_plan():
    """(target input-block bytes, vmem_limit_bytes) per TPU generation."""
    try:
        info = pltpu.get_tpu_info()
        vmem = getattr(info, "vmem_capacity_bytes", None) or (64 << 20)
    except Exception:  # be robust if the query is unavailable
        vmem = 64 << 20
    if vmem <= (64 << 20):      # v7x: 64 MiB physical per TC -> smaller budget
        return 4 << 20, 28 << 20
    return 6 << 20, 40 << 20    # v5e / v6e: 128 MiB physical VMEM


def layernorm_pallas(x2d, gamma, beta, *, eps=_LN_EPS, block_rows=None):
    """LayerNorm over the last axis of a (R, C) array via a row-tiled kernel."""
    R, C = x2d.shape
    target_block_bytes, vmem_limit = _vmem_plan()

    # Lane-dense repack: fold g consecutive rows into one row of width g*C
    # (a multiple of 128).  Pure row-major reshape -> no transpose, no copy.
    g = 1
    if C % 128 != 0:
        g_try = 128 // math.gcd(C, 128)
        if R % g_try == 0:
            g = g_try
    c_eff = g * C
    rows = R // g
    xw = x2d.reshape(rows, c_eff) if g > 1 else x2d

    gv = jnp.tile(gamma.astype(jnp.float32).reshape(1, C), (1, g))
    bv = jnp.tile(beta.astype(jnp.float32).reshape(1, C), (1, g))

    # Byte-targeted row tile (real dtype itemsize; f32 math lives in vregs).
    itemsize = jnp.dtype(x2d.dtype).itemsize
    bytes_per_row = c_eff * itemsize
    tm_target = block_rows if block_rows is not None else max(
        8, target_block_bytes // bytes_per_row)
    if tm_target >= rows:
        tm_eff = rows                       # single block == full dim is legal
    else:
        tm_eff = max(8, (tm_target // 8) * 8)   # sublane-aligned
    grid_n = pl.cdiv(rows, tm_eff)          # last block masked, no padding

    row_spec = pl.BlockSpec((tm_eff, c_eff), lambda i: (i, 0))
    par_spec = pl.BlockSpec((1, c_eff), lambda i: (0, 0))

    if g > 1:
        # Constant block-diagonal ones matrix for the MXU segmented reduction.
        ids = jnp.arange(c_eff) // C
        seg = (ids[:, None] == ids[None, :]).astype(jnp.float32)
        kernel = functools.partial(_ln_packed_kernel, inv_c=1.0 / C, eps=eps)
        in_specs = [row_spec,
                    pl.BlockSpec((c_eff, c_eff), lambda i: (0, 0)),
                    par_spec, par_spec]
        args = (xw, seg, gv, bv)
    else:
        kernel = functools.partial(_ln_plain_kernel, inv_c=1.0 / C, eps=eps)
        in_specs = [row_spec, par_spec, par_spec]
        args = (xw, gv, bv)

    out = pl.pallas_call(
        kernel,
        out_shape=jax.ShapeDtypeStruct((rows, c_eff), x2d.dtype),
        grid_spec=pltpu.PrefetchScalarGridSpec(
            num_scalar_prefetch=0,
            grid=(grid_n,),
            in_specs=in_specs,
            out_specs=row_spec,
        ),
        compiler_params=pltpu.CompilerParams(
            dimension_semantics=("parallel",),   # shards rows over v7x's 2 TCs
            vmem_limit_bytes=vmem_limit,
        ),
    )(*args)

    return out.reshape(R, C) if g > 1 else out


class FinalPatchExpandX41:
    """JAX/Pallas port of FinalPatchExpand_X4_1 (forward only)."""

    def __init__(self, input_resolution, dim, dim_scale=1):
        self.input_resolution = input_resolution
        self.dim = dim
        self.dim_scale = dim_scale
        self.output_dim = dim
        # nn.LayerNorm default-initialised parameters.
        self.gamma = jnp.ones((self.output_dim,), jnp.float32)
        self.beta = jnp.zeros((self.output_dim,), jnp.float32)

    def __call__(self, x):
        H, W = self.input_resolution
        B, L, C = x.shape
        assert L == H * W, "input feature has wrong size"
        p = self.dim_scale
        if p == 1:
            # rearrange with p1=p2=1 is the identity permutation: no layout glue.
            rows = x.reshape(B * L, C)
        else:
            # TODO(synk): fold this rearrange into the pallas_call index_map
            # (grid over (b, h-tiles)) instead of a separate XLA transpose.
            c = C // (p * p)
            xv = x.reshape(B, H, W, p, p, c)
            xv = jnp.transpose(xv, (0, 1, 3, 2, 4, 5))      # b h p1 w p2 c
            rows = xv.reshape(-1, self.output_dim)
        y = layernorm_pallas(rows, self.gamma, self.beta)
        return y.reshape(B, -1, self.output_dim)


def _layernorm_ref(x, gamma, beta, eps=_LN_EPS):
    xf = x.astype(jnp.float32)
    mean = jnp.mean(xf, axis=-1, keepdims=True)
    var = jnp.mean((xf - mean) ** 2, axis=-1, keepdims=True)
    y = (xf - mean) * lax.rsqrt(var + eps) * gamma + beta
    return y.astype(x.dtype)


if __name__ == "__main__":
    key = jax.random.PRNGKey(0)

    # Case 1: module default path (dim_scale=1, C=32 -> lane-dense packed/MXU path).
    B, H, W, C = 2, 8, 8, 32
    x = jax.random.normal(key, (B, H * W, C), dtype=jnp.float32)
    module = FinalPatchExpandX41(input_resolution=(H, W), dim=C, dim_scale=1)
    # Non-trivial affine params for a stronger numerical check.
    module.gamma = 1.0 + 0.1 * jax.random.normal(jax.random.PRNGKey(1), (C,), jnp.float32)
    module.beta = 0.1 * jax.random.normal(jax.random.PRNGKey(2), (C,), jnp.float32)
    out = jax.block_until_ready(module(x))
    assert out.shape == (B, H * W, C), out.shape
    ref = _layernorm_ref(x, module.gamma, module.beta)
    assert float(jnp.max(jnp.abs(out - ref))) < 1e-4

    # Case 2: force a non-divisible row tile -> last block uses masked stores.
    out2 = layernorm_pallas(x.reshape(-1, C), module.gamma, module.beta,
                            block_rows=24)
    out2 = jax.block_until_ready(out2).reshape(B, -1, C)
    assert float(jnp.max(jnp.abs(out2 - ref))) < 1e-4

    # Case 3: fallback plain path (C not a multiple of 128, rows not divisible by g).
    H2, W2, C2 = 7, 9, 48
    x3 = jax.random.normal(jax.random.PRNGKey(3), (B, H2 * W2, C2), jnp.float32)
    m3 = FinalPatchExpandX41(input_resolution=(H2, W2), dim=C2, dim_scale=1)
    out3 = jax.block_until_ready(m3(x3))
    ref3 = _layernorm_ref(x3, m3.gamma, m3.beta)
    assert out3.shape == (B, H2 * W2, C2), out3.shape
    assert float(jnp.max(jnp.abs(out3 - ref3))) < 1e-4

    print("KERNEL_OK")
</pallas_src>

<mosaic_0001>
module attributes {stable_mosaic.version = 11 : i64} {
  func.func @_ln_packed_kernel(%arg0: i32, %arg1: memref<32x128xf32, #tpu.memory_space<vmem>>, %arg2: memref<128x128xf32, #tpu.memory_space<vmem>>, %arg3: memref<1x128xf32, #tpu.memory_space<vmem>>, %arg4: memref<1x128xf32, #tpu.memory_space<vmem>>, %arg5: memref<32x128xf32, #tpu.memory_space<vmem>>) attributes {dimension_semantics = [#tpu.dimension_semantics<parallel>], iteration_bounds = array<i64: 1>, scalar_prefetch = 0 : i64, scratch_operands = 0 : i64, tpu.core_type = #tpu.core_type<tc>, window_params = [{transform_indices = @transform_0, window_bounds = array<i64: 32, 128>}, {pipeline_mode = #tpu.pipeline_mode<synchronous>, transform_indices = @transform_1, window_bounds = array<i64: 128, 128>}, {pipeline_mode = #tpu.pipeline_mode<synchronous>, transform_indices = @transform_2, window_bounds = array<i64: 1, 128>}, {pipeline_mode = #tpu.pipeline_mode<synchronous>, transform_indices = @transform_3, window_bounds = array<i64: 1, 128>}, {transform_indices = @transform_4, window_bounds = array<i64: 32, 128>}]} {
    %c0 = arith.constant 0 : index
    %c0_0 = arith.constant 0 : index
    %0 = vector.load %arg1[%c0, %c0_0] : memref<32x128xf32, #tpu.memory_space<vmem>>, vector<32x128xf32>
    %c0_1 = arith.constant 0 : index
    %c0_2 = arith.constant 0 : index
    %1 = vector.load %arg2[%c0_1, %c0_2] : memref<128x128xf32, #tpu.memory_space<vmem>>, vector<128x128xf32>
    %cst = arith.constant dense<0.000000e+00> : vector<32x128xf32>
    %2 = tpu.matmul %0, %1, %cst {dimension_numbers = #tpu.dot_dimension_numbers<[1], [0], [0], [1], [0, 0, 1, 1], [], []>} : vector<32x128xf32>, vector<128x128xf32>, vector<32x128xf32> -> vector<32x128xf32>
    %cst_3 = arith.constant 3.125000e-02 : f32
    %3 = vector.broadcast %cst_3 : f32 to vector<32x128xf32>
    %4 = arith.mulf %2, %3 : vector<32x128xf32>
    %5 = arith.subf %0, %4 : vector<32x128xf32>
    %6 = arith.mulf %5, %5 : vector<32x128xf32>
    %cst_4 = arith.constant dense<0.000000e+00> : vector<32x128xf32>
    %7 = tpu.matmul %6, %1, %cst_4 {dimension_numbers = #tpu.dot_dimension_numbers<[1], [0], [0], [1], [0, 0, 1, 1], [], []>} : vector<32x128xf32>, vector<128x128xf32>, vector<32x128xf32> -> vector<32x128xf32>
    %cst_5 = arith.constant 3.125000e-02 : f32
    %8 = vector.broadcast %cst_5 : f32 to vector<32x128xf32>
    %9 = arith.mulf %7, %8 : vector<32x128xf32>
    %cst_6 = arith.constant 9.99999974E-6 : f32
    %10 = vector.broadcast %cst_6 : f32 to vector<32x128xf32>
    %11 = arith.addf %9, %10 : vector<32x128xf32>
    %12 = math.rsqrt %11 : vector<32x128xf32>
    %13 = arith.mulf %5, %12 : vector<32x128xf32>
    %c0_7 = arith.constant 0 : index
    %c0_8 = arith.constant 0 : index
    %14 = vector.load %arg3[%c0_7, %c0_8] : memref<1x128xf32, #tpu.memory_space<vmem>>, vector<1x128xf32>
    %15 = vector.broadcast %14 : vector<1x128xf32> to vector<32x128xf32>
    %16 = arith.mulf %13, %15 : vector<32x128xf32>
    %c0_9 = arith.constant 0 : index
    %c0_10 = arith.constant 0 : index
    %17 = vector.load %arg4[%c0_9, %c0_10] : memref<1x128xf32, #tpu.memory_space<vmem>>, vector<1x128xf32>
    %18 = vector.broadcast %17 : vector<1x128xf32> to vector<32x128xf32>
    %19 = arith.addf %16, %18 : vector<32x128xf32>
    %c0_11 = arith.constant 0 : index
    %c0_12 = arith.constant 0 : index
    %20 = vector.load %arg5[%c0_11, %c0_12] : memref<32x128xf32, #tpu.memory_space<vmem>>, vector<32x128xf32>
    tpu.vector_store %arg5[%c0_11, %c0_12], %19 {strides = array<i32>} : memref<32x128xf32, #tpu.memory_space<vmem>>, vector<32x128xf32>,
    return
  }
  func.func @transform_0(%arg0: i32) -> (i32, i32) {
    %c0_i32 = arith.constant 0 : i32
    %c0_i32_0 = arith.constant 0 : i32
    return %arg0, %c0_i32 : i32, i32
  }
  func.func @transform_1(%arg0: i32) -> (i32, i32) {
    %c0_i32 = arith.constant 0 : i32
    %c0_i32_0 = arith.constant 0 : i32
    %c0_i32_1 = arith.constant 0 : i32
    return %c0_i32, %c0_i32_0 : i32, i32
  }
  func.func @transform_2(%arg0: i32) -> (i32, i32) {
    %c0_i32 = arith.constant 0 : i32
    %c0_i32_0 = arith.constant 0 : i32
    %c0_i32_1 = arith.constant 0 : i32
    return %c0_i32, %c0_i32_0 : i32, i32
  }
  func.func @transform_3(%arg0: i32) -> (i32, i32) {
    %c0_i32 = arith.constant 0 : i32
    %c0_i32_0 = arith.constant 0 : i32
    %c0_i32_1 = arith.constant 0 : i32
    return %c0_i32, %c0_i32_0 : i32, i32
  }
  func.func @transform_4(%arg0: i32) -> (i32, i32) {
    %c0_i32 = arith.constant 0 : i32
    %c0_i32_0 = arith.constant 0 : i32
    return %arg0, %c0_i32 : i32, i32
  }
}

</mosaic_0001>

<bundles_post_ra>
// kernel: tpu_custom_call.1
= control target key start
LH: loop header
LB: loop body
LE: loop exit
PB: predicated region body
PF: predicated region fallthrough
CT: control target
= control target key end

     0   :  { %9 = vsyncpa [#allocation3], 0  ;;  %s421_s0 = inlined_call_operand.hbm [shape: f32[32,128], index: 0, kind: input, shape index: {}]   ;;  %s422_s1 = inlined_call_operand.hbm [shape: f32[128,128], index: 1, kind: input, shape index: {}]   ;;  %s423_s2 = inlined_call_operand.vmem [shape: f32[1,128], index: 2, kind: input, shape index: {}]   ;;  %s424_s3 = inlined_call_operand.vmem [shape: f32[1,128], index: 3, kind: input, shape index: {}]   ;;  %s425_s4 = inlined_call_operand.hbm [shape: f32[32,128], index: 4, kind: output, shape index: {}]  }
   0x1   :  { %10 = vsyncpa [#allocation6], 0 }
   0x2   :  { %11 = vsyncpa [#allocation4], 0  ;;  %s16_s17 = sshll.u32 %s421_s0, 4  ;;  %s357_s18 = smov [#allocation2]   ;;  %s17_s17 = int_to_ptr.hbm [resolvable:$true] %s16_s17 }
   0x3   :  { %s18_s19 = sshll.u32 %s357_s18, 4  ;;  %s29_s22 = sshll.u32 %s422_s1, 4  ;;  %s19_s19 = int_to_ptr.vmem [resolvable:$true] %s18_s19  ;;  %s30_s22 = int_to_ptr.hbm [resolvable:$true] %s29_s22 }
   0x4   :  { %s358_s23 = smov 128   ;;  %s359_s24 = smov 8  }
   0x5   :  { %24 = dma.hbm_to_vmem [thread:$0]  %s17_s17, 512, %s19_s19, [#allocation3], %s358_s23, %s358_s23, %s359_s24  }
   0x6   :  { %s360_s25 = smov [#allocation5]  }
   0x7   :  { %s31_s26 = sshll.u32 %s360_s25, 4  ;;  %s32_s26 = int_to_ptr.vmem [resolvable:$true] %s31_s26 }
   0x8   :  { %37 = dma.hbm_to_vmem [thread:$0]  %s30_s22, 2048, %s32_s26, [#allocation6], %s358_s23, %s358_s23, %s359_s24  }
   0x9   :  { %351 = dma.done.wait [#allocation3], 512  }
   0xa   :  { %352 = vsyncadd [#allocation3], 4294966784 }
   0xb   :  { %353 = dma.done.wait [#allocation6], 2048  }
   0xc   :  { %354 = vsyncadd [#allocation6], 4294965248  ;;  %v69_v0 = vld [vmem:[#allocation5 + $0x78] sm:$0xff]  ;;  %v68_v1 = vld [vmem:[#allocation5 + $0x70] sm:$0xff]  ;;  %s218_s5 = sshll.u32 %s425_s4, 4  ;;  %s219_s5 = int_to_ptr.hbm [resolvable:$true] %s218_s5 }
   0xd   :  { %70 = vmatpush.msra.mxu0 %v69_v0  ;;  %232 = vmatpush.msra.mxu2 %v69_v0  ;;  %v67_v2 = vld [vmem:[#allocation5 + $0x68] sm:$0xff]  ;;  %v66_v3 = vld [vmem:[#allocation5 + $0x60] sm:$0xff]  ;;  %v65_v4 = vld [vmem:[#allocation5 + $0x58] sm:$0xff] }
   0xe   :  { %111 = vmatpush.msra.mxu1 %v69_v0  ;;  %248 = vmatpush.msra.mxu3 %v69_v0  ;;  %v64_v5 = vld [vmem:[#allocation5 + $0x50] sm:$0xff]  ;;  %v63_v6 = vld [vmem:[#allocation5 + $0x48] sm:$0xff]  ;;  %v62_v7 = vld [vmem:[#allocation5 + $0x40] sm:$0xff] }
   0xf   :  { %71 = vmatpush.msra.mxu0 %v68_v1  ;;  %233 = vmatpush.msra.mxu2 %v68_v1  ;;  %v61_v8 = vld [vmem:[#allocation5 + $0x38] sm:$0xff]  ;;  %v60_v9 = vld [vmem:[#allocation5 + $0x30] sm:$0xff]  ;;  %v59_v10 = vld [vmem:[#allocation5 + $0x28] sm:$0xff] }
  0x10   :  { %112 = vmatpush.msra.mxu1 %v68_v1  ;;  %249 = vmatpush.msra.mxu3 %v68_v1  ;;  %v58_v11 = vld [vmem:[#allocation5 + $0x20] sm:$0xff]  ;;  %v57_v12 = vld [vmem:[#allocation5 + $0x18] sm:$0xff]  ;;  %v56_v13 = vld [vmem:[#allocation5 + $0x10] sm:$0xff] }
  0x11   :  { %72 = vmatpush.msra.mxu0 %v67_v2  ;;  %234 = vmatpush.msra.mxu2 %v67_v2  ;;  %v55_v14 = vld [vmem:[#allocation5 + $0x8] sm:$0xff]  ;;  %v54_v15 = vld [vmem:[#allocation5] sm:$0xff]  ;;  %v52_v17 = vld [vmem:[#allocation2 + $0x10] sm:$0xff] }
  0x12   :  { %113 = vmatpush.msra.mxu1 %v67_v2  ;;  %250 = vmatpush.msra.mxu3 %v67_v2  ;;  %v50_v16 = vld [vmem:[#allocation2] sm:$0xff]  ;;  %v51_v18 = vld [vmem:[#allocation2 + $0x8] sm:$0xff]  ;;  %v53_v19 = vld [vmem:[#allocation2 + $0x18] sm:$0xff] }
  0x13   :  { %73 = vmatpush.msra.mxu0 %v66_v3  ;;  %235 = vmatpush.msra.mxu2 %v66_v3  ;;  %v269_v54 = vld [vmem:[%s423_s2] ss:$0 sm:$0xff]  ;;  %s361_s2 = smov [#allocation7]  }
  0x14   :  { %114 = vmatpush.msra.mxu1 %v66_v3  ;;  %251 = vmatpush.msra.mxu3 %v66_v3  ;;  %v270_v60 = vld [vmem:[%s424_s3] ss:$0 sm:$0xff]  ;;  %s216_s3 = sshll.u32 %s361_s2, 4  ;;  %s217_s3 = int_to_ptr.vmem [resolvable:$true] %s216_s3 }
  0x15   :  { %74 = vmatpush.msra.mxu0 %v65_v4  ;;  %236 = vmatpush.msra.mxu2 %v65_v4 }
  0x16   :  { %115 = vmatpush.msra.mxu1 %v65_v4  ;;  %252 = vmatpush.msra.mxu3 %v65_v4 }
  0x17   :  { %75 = vmatpush.msra.mxu0 %v64_v5  ;;  %237 = vmatpush.msra.mxu2 %v64_v5 }
  0x18   :  { %116 = vmatpush.msra.mxu1 %v64_v5  ;;  %253 = vmatpush.msra.mxu3 %v64_v5 }
  0x19   :  { %76 = vmatpush.msra.mxu0 %v63_v6  ;;  %238 = vmatpush.msra.mxu2 %v63_v6 }
  0x1a   :  { %117 = vmatpush.msra.mxu1 %v63_v6  ;;  %254 = vmatpush.msra.mxu3 %v63_v6 }
  0x1b   :  { %77 = vmatpush.msra.mxu0 %v62_v7  ;;  %239 = vmatpush.msra.mxu2 %v62_v7 }
  0x1c   :  { %118 = vmatpush.msra.mxu1 %v62_v7  ;;  %255 = vmatpush.msra.mxu3 %v62_v7 }
  0x1d   :  { %78 = vmatpush.msra.mxu0 %v61_v8  ;;  %240 = vmatpush.msra.mxu2 %v61_v8 }
  0x1e   :  { %119 = vmatpush.msra.mxu1 %v61_v8  ;;  %256 = vmatpush.msra.mxu3 %v61_v8 }
  0x1f   :  { %79 = vmatpush.msra.mxu0 %v60_v9  ;;  %241 = vmatpush.msra.mxu2 %v60_v9 }
  0x20   :  { %120 = vmatpush.msra.mxu1 %v60_v9  ;;  %257 = vmatpush.msra.mxu3 %v60_v9 }
  0x21   :  { %80 = vmatpush.msra.mxu0 %v59_v10  ;;  %242 = vmatpush.msra.mxu2 %v59_v10 }
  0x22   :  { %121 = vmatpush.msra.mxu1 %v59_v10  ;;  %258 = vmatpush.msra.mxu3 %v59_v10 }
  0x23   :  { %81 = vmatpush.msra.mxu0 %v58_v11  ;;  %243 = vmatpush.msra.mxu2 %v58_v11 }
  0x24   :  { %122 = vmatpush.msra.mxu1 %v58_v11  ;;  %259 = vmatpush.msra.mxu3 %v58_v11 }
  0x25   :  { %82 = vmatpush.msra.mxu0 %v57_v12  ;;  %244 = vmatpush.msra.mxu2 %v57_v12 }
  0x26   :  { %123 = vmatpush.msra.mxu1 %v57_v12  ;;  %260 = vmatpush.msra.mxu3 %v57_v12 }
  0x27   :  { %83 = vmatpush.msra.mxu0 %v56_v13  ;;  %245 = vmatpush.msra.mxu2 %v56_v13 }
  0x28   :  { %124 = vmatpush.msra.mxu1 %v56_v13  ;;  %261 = vmatpush.msra.mxu3 %v56_v13 }
  0x29   :  { %84 = vmatpush.msra.mxu0 %v55_v14  ;;  %246 = vmatpush.msra.mxu2 %v55_v14 }
  0x2a   :  { %125 = vmatpush.msra.mxu1 %v55_v14  ;;  %262 = vmatpush.msra.mxu3 %v55_v14 }
  0x2b   :  { %85 = vmatpush.msra.mxu0 %v54_v15  ;;  %247 = vmatpush.msra.mxu2 %v54_v15 }
  0x2c   :  { %86 = vmatmul.f32.vlgmr.msra.gmra.mxu0 %v50_v16  ;;  %92 = vmatmul.f32.vlgmr.msra.gmra.mxu2 %v52_v17 }
  0x2d   :  { %126 = vmatpush.msra.mxu1 %v54_v15  ;;  %263 = vmatpush.msra.mxu3 %v54_v15 }
  0x34   :  { %89 = vmatmul.f32.gmra.mxu0 %v51_v18  ;;  %95 = vmatmul.f32.gmra.mxu2 %v53_v19 }
  0xa9   :  { %v87_v20 = vpop.f32.mrf.mxu0 }
  0xaa   :  { %v99_v21 = vmul.f32 0.03125, %v87_v20 }
  0xac   :  { %v103_v22 = vsub.f32 %v50_v16, %v99_v21 }
  0xae   :  { %v107_v23 = vmul.f32 %v103_v22, %v103_v22 }
  0xaf   :  { %v93_v24 = vpop.f32.mrf.mxu2 }
  0xb0   :  { %v101_v25 = vmul.f32 0.03125, %v93_v24  ;;  %127 = vmatmul.f32.vlgmr.msra.gmra.mxu1 %v107_v23 }
  0xb1   :  { %v90_v26 = vpop.f32.mrf.mxu0 }
  0xb2   :  { %v399_v27 = vsub.f32 %v52_v17, %v101_v25  ;;  %v100_v28 = vmul.f32 0.03125, %v90_v26 }
  0xb4   :  { %v104_v29 = vsub.f32 %v51_v18, %v100_v28  ;;  %v109_v30 = vmul.f32 %v399_v27, %v399_v27 }
  0xb6   :  { %133 = vmatmul.f32.vlgmr.msra.gmra.mxu3 %v109_v30  ;;  %v108_v31 = vmul.f32 %v104_v29, %v104_v29 }
  0xb7   :  { %v96_v32 = vpop.f32.mrf.mxu2 }
  0xb8   :  { %v102_v33 = vmul.f32 0.03125, %v96_v32  ;;  %130 = vmatmul.f32.gmra.mxu1 %v108_v31 }
  0xba   :  { %v403_v34 = vsub.f32 %v53_v19, %v102_v33 }
  0xbc   :  { %v110_v35 = vmul.f32 %v403_v34, %v403_v34 }
  0xbe   :  { %136 = vmatmul.f32.gmra.mxu3 %v110_v35 }
 0x12d   :  { %v128_v36 = vpop.f32.mrf.mxu1 }
 0x12e   :  { %v140_v37 = vmul.f32 0.03125, %v128_v36 }
 0x130   :  { %v144_v38 = vadd.f32 1e-05, %v140_v37 }
 0x132   :  { %271 = vrsqrt.f32 %v144_v38  ;;  %vm154_vm0 = vweird.f32 %v144_v38 }
 0x135   :  { %v131_v39 = vpop.f32.mrf.mxu1 }
 0x136   :  { %v141_v40 = vmul.f32 0.03125, %v131_v39 }
 0x138   :  { %v272_v41 = vpop.eup %271  ;;  %v145_v42 = vadd.f32 1e-05, %v141_v40 }
 0x139   :  { %v149_v43 = vmul.f32 %v272_v41, %v144_v38  ;;  %v134_v44 = vpop.f32.mrf.mxu3  ;;  %vm155_vm1 = vweird.f32 %v272_v41 }
 0x13a   :  { %273 = vrsqrt.f32 %v145_v42  ;;  %v142_v45 = vmul.f32 0.03125, %v134_v44  ;;  %vm156_vm2 = vmor %vm154_vm0, %vm155_vm1  ;;  %vm164_vm3 = vweird.f32 %v145_v42 }
 0x13b   :  { %v150_v46 = vmul.f32 %v272_v41, %v149_v43 }
 0x13c   :  { %v146_v47 = vadd.f32 1e-05, %v142_v45 }
 0x13d   :  { %v151_v48 = vmul.f32 0.5, %v150_v46 }
 0x13e   :  { %275 = vrsqrt.f32 %v146_v47  ;;  %vm174_vm7 = vweird.f32 %v146_v47 }
 0x13f   :  { %v152_v49 = vsub.f32 1.5, %v151_v48 }
 0x140   :  { %v274_v50 = vpop.eup %273 }
 0x141   :  { %v153_v51 = vmul.f32 %v272_v41, %v152_v49  ;;  %v159_v52 = vmul.f32 %v274_v50, %v145_v42  ;;  %v137_v53 = vpop.f32.mrf.mxu3  ;;  %vm165_vm4 = vweird.f32 %v274_v50 }
 0x142   :  { %v143_v55 = vmul.f32 0.03125, %v137_v53  ;;  %vm166_vm5 = vmor %vm164_vm3, %vm165_vm4 }
 0x143   :  { %v157_v56 = vsel %vm156_vm2, %v272_v41, %v153_v51  ;;  %v160_v57 = vmul.f32 %v274_v50, %v159_v52 }
 0x144   :  { %v276_v58 = vpop.eup %275  ;;  %v188_v59 = vmul.f32 %v157_v56, %v103_v22  ;;  %v147_v61 = vadd.f32 1e-05, %v143_v55 }
 0x145   :  { %v161_v62 = vmul.f32 0.5, %v160_v57  ;;  %v169_v63 = vmul.f32 %v276_v58, %v146_v47  ;;  %vm175_vm6 = vweird.f32 %v276_v58 }
 0x146   :  { %v196_v0 = vmul.f32 %v269_v54, %v188_v59  ;;  %277 = vrsqrt.f32 %v147_v61  ;;  %vm176_vm8 = vmor %vm174_vm7, %vm175_vm6  ;;  %vm184_vm10 = vweird.f32 %v147_v61 }
 0x147   :  { %v162_v1 = vsub.f32 1.5, %v161_v62  ;;  %v170_v2 = vmul.f32 %v276_v58, %v169_v63 }
 0x148   :  { %v204_v3 = vadd.f32 %v270_v60, %v196_v0 }
 0x149   :  { %v163_v4 = vmul.f32 %v274_v50, %v162_v1  ;;  %v171_v5 = vmul.f32 0.5, %v170_v2 }
 0x14a   :  { %208 = vst [vmem:[#allocation7] sm:$0xff] %v204_v3 }
 0x14b   :  { %v167_v6 = vsel %vm166_vm5, %v274_v50, %v163_v4  ;;  %v172_v7 = vsub.f32 1.5, %v171_v5 }
 0x14c   :  { %v278_v8 = vpop.eup %277  ;;  %v189_v9 = vmul.f32 %v167_v6, %v104_v29 }
 0x14d   :  { %v173_v10 = vmul.f32 %v276_v58, %v172_v7  ;;  %v179_v11 = vmul.f32 %v278_v8, %v147_v61  ;;  %vm185_vm9 = vweird.f32 %v278_v8 }
 0x14e   :  { %v197_v12 = vmul.f32 %v269_v54, %v189_v9  ;;  %vm186_vm11 = vmor %vm184_vm10, %vm185_vm9 }
 0x14f   :  { %v177_v13 = vsel %vm176_vm8, %v276_v58, %v173_v10  ;;  %v180_v14 = vmul.f32 %v278_v8, %v179_v11 }
 0x150   :  { %v205_v15 = vadd.f32 %v270_v60, %v197_v12  ;;  %v190_v16 = vmul.f32 %v177_v13, %v399_v27 }
 0x151   :  { %v181_v17 = vmul.f32 0.5, %v180_v14 }
 0x152   :  { %209 = vst [vmem:[#allocation7 + $0x8] sm:$0xff] %v205_v15  ;;  %v198_v18 = vmul.f32 %v269_v54, %v190_v16 }
 0x153   :  { %v182_v19 = vsub.f32 1.5, %v181_v17 }
 0x154   :  { %v206_v20 = vadd.f32 %v270_v60, %v198_v18 }
 0x155   :  { %v183_v21 = vmul.f32 %v278_v8, %v182_v19 }
 0x156   :  { %210 = vst [vmem:[#allocation7 + $0x10] sm:$0xff] %v206_v20 }
 0x157   :  { %v187_v22 = vsel %vm186_vm11, %v278_v8, %v183_v21 }
 0x158   :  { %v191_v23 = vmul.f32 %v187_v22, %v403_v34 }
 0x15a   :  { %v199_v24 = vmul.f32 %v269_v54, %v191_v23 }
 0x15c   :  { %v207_v25 = vadd.f32 %v270_v60, %v199_v24 }
 0x15e   :  { %211 = vst [vmem:[#allocation7 + $0x18] sm:$0xff] %v207_v25 }
 0x15f   :  { %224 = dma.vmem_to_hbm [thread:$0]  %s217_s3, 512, %s219_s5, [#allocation4], %s358_s23, %s358_s23, %s359_s24  }
 0x160   :  { %355 = dma.done.wait [#allocation4], 512  }
 0x161   :  { %356 = vsyncadd [#allocation4], 4294966784 }
 0x162   :  { %229 = vsyncpa [#allocation3], 1 }
 0x163   :  { %230 = vsyncpa [#allocation6], 1 }
 0x164   :  { %231 = vsyncpa [#allocation4], 1 }

</bundles_post_ra>
